<compile_context>
chip_gen: v5e
topology: v5e:2x2
jax: 0.10.0
libtpu: 0.0.40
codegen_flags: <defaults>
</compile_context>

<pallas_src>
import jax
import jax.numpy as jnp
import numpy as np
from jax.experimental import pallas as pl
from jax.experimental.pallas import tpu as pltpu


def _round_up(x, m):
    return ((x + m - 1) // m) * m


def _broadcast_kernel(y_ref, out_ref):
    # y_ref:   (t_r, 1)   one value per (batch*channel) row, resident across lane tiles
    # out_ref: (t_r, t_l) lane-dense output tile -> full unmasked vst (last block masked)
    t_r, t_l = out_ref.shape
    out_ref[...] = jnp.broadcast_to(y_ref[...], (t_r, t_l))


def complex_sinusoidal_embedding(noise_rates, out_channels, N, *,
                                 out_dtype=jnp.float32,
                                 lane_tile_target=2048,
                                 max_block_bytes=8 * 1024 * 1024):
    """Pallas implementation of ComplexSinusoidalEmbedding.forward (float dtype)."""
    assert out_channels % 2 == 0 and out_channels >= 4, "need even out_channels >= 4"
    noise = jnp.reshape(noise_rates, (-1,)).astype(jnp.float32)   # torch .squeeze()
    B = noise.shape[0]
    C = out_channels
    L = C // 2
    NN = N * N
    BC = B * C

    # Tiny (B, C) sin/cos table, computed once with plain JAX ops (identical to the
    # reference / PyTorch float branch).  Cast once if bf16 output is requested.
    n = jnp.arange(L, dtype=jnp.float32)
    freqs = (2.0 * np.pi) * jnp.exp(n * (np.log(1000.0) / (L - 1)))     # (L,) f32
    theta = jnp.einsum('i,j->ij', noise, freqs)                         # (B, L)
    y = jnp.concatenate([jnp.sin(theta), jnp.cos(theta)], axis=1)       # (B, C)
    y = y.astype(out_dtype).reshape(BC, 1)                              # (B*C, 1)

    itemsize = np.dtype(out_dtype).itemsize

    # Lane tile: fixed multiple of 128, cdiv grid (last block masked).  For small
    # N*N, shrink so the grid has >= 2 steps (lets v7x's 2 TCs split the work).
    t_l = min(lane_tile_target, _round_up(NN, 128))
    while t_l > 128 and pl.cdiv(NN, t_l) < 2:
        t_l = max(128, (t_l // 2) // 128 * 128)

    # Row tile: full B*C when a double-buffered output block stays small; otherwise
    # a multiple-of-8 tile so large B*C never blows the scoped VMEM limit (v7x-safe).
    cap = max(8, (max_block_bytes // (t_l * itemsize)) // 8 * 8)
    t_r = BC if BC <= cap else cap

    grid = (pl.cdiv(BC, t_r), pl.cdiv(NN, t_l))

    out_flat = pl.pallas_call(
        _broadcast_kernel,
        out_shape=jax.ShapeDtypeStruct((BC, NN), out_dtype),
        grid=grid,
        in_specs=[pl.BlockSpec((t_r, 1), lambda i, j: (i, 0))],      # resident across j
        out_specs=pl.BlockSpec((t_r, t_l), lambda i, j: (i, j)),
        compiler_params=pltpu.CompilerParams(
            dimension_semantics=("parallel", "parallel"),            # megacore split
            vmem_limit_bytes=32 * 1024 * 1024,                        # above v5e's 16 MiB default
        ),
    )(y)

    # Free row-major reshape back to NCHW; matches torch's repeat(1, 1, N, N).
    return out_flat.reshape(B, C, N, N)


def _reference(noise_rates, out_channels, N):
    # pure-JAX reference of the PyTorch float branch
    noise = jnp.reshape(noise_rates, (-1,)).astype(jnp.float32)
    L = out_channels // 2
    n = jnp.arange(L, dtype=jnp.float32)
    freqs = (2.0 * np.pi) * jnp.exp(n * (np.log(1000.0) / (L - 1)))
    theta = jnp.einsum('i,j->ij', noise, freqs)
    y = jnp.concatenate([jnp.sin(theta), jnp.cos(theta)], axis=1)
    return jnp.broadcast_to(y[:, :, None, None], (noise.shape[0], out_channels, N, N))


if __name__ == "__main__":
    key = jax.random.PRNGKey(0)

    # primary config: batch=2, out_channels=8, N=16; noise given as (B,1,1,1), squeezed inside
    batch_size, out_channels, N = 2, 8, 16
    noise_rates = jax.random.uniform(key, (batch_size, 1, 1, 1), dtype=jnp.float32)

    out = complex_sinusoidal_embedding(noise_rates, out_channels, N)
    out = jax.block_until_ready(out)
    ref = _reference(noise_rates, out_channels, N)
    assert out.shape == (batch_size, out_channels, N, N)
    np.testing.assert_allclose(np.asarray(out), np.asarray(ref), rtol=1e-5, atol=1e-5)

    # second config: N=24 -> N*N=576 (not a multiple of 128).  With a small lane-tile
    # target this exercises the cdiv grid with a masked last spatial block.
    batch_size2, out_channels2, N2 = 2, 8, 24
    noise_rates2 = jax.random.uniform(jax.random.PRNGKey(1), (batch_size2, 1),
                                      dtype=jnp.float32)
    out2 = complex_sinusoidal_embedding(noise_rates2, out_channels2, N2,
                                        lane_tile_target=256)   # grid lanes = 3, last masked
    out2 = jax.block_until_ready(out2)
    ref2 = _reference(noise_rates2, out_channels2, N2)
    np.testing.assert_allclose(np.asarray(out2), np.asarray(ref2), rtol=1e-5, atol=1e-5)

    # third config: odd B*C (= 18, not a multiple of 8) -> full-extent row block path,
    # plus an opt-in bfloat16 output (halves HBM bytes on this store-bound kernel).
    batch_size3, out_channels3, N3 = 3, 6, 16
    noise_rates3 = jax.random.uniform(jax.random.PRNGKey(2), (batch_size3, 1, 1, 1),
                                      dtype=jnp.float32)
    out3 = complex_sinusoidal_embedding(noise_rates3, out_channels3, N3,
                                        out_dtype=jnp.bfloat16)
    out3 = jax.block_until_ready(out3)
    ref3 = _reference(noise_rates3, out_channels3, N3)
    np.testing.assert_allclose(np.asarray(out3, dtype=np.float32), np.asarray(ref3),
                               rtol=0.0, atol=1e-2)

    print("KERNEL_OK")
</pallas_src>

<mosaic_0001>
module attributes {stable_mosaic.version = 11 : i64} {
  func.func @_broadcast_kernel(%arg0: i32, %arg1: i32, %arg2: memref<16x1xf32, #tpu.memory_space<vmem>>, %arg3: memref<16x128xf32, #tpu.memory_space<vmem>>) attributes {dimension_semantics = [#tpu.dimension_semantics<parallel>, #tpu.dimension_semantics<parallel>], iteration_bounds = array<i64: 1, 2>, scalar_prefetch = 0 : i64, scratch_operands = 0 : i64, tpu.core_type = #tpu.core_type<tc>, window_params = [{transform_indices = @transform_0, window_bounds = array<i64: 16, 1>}, {transform_indices = @transform_1, window_bounds = array<i64: 16, 128>}]} {
    %c0 = arith.constant 0 : index
    %c0_0 = arith.constant 0 : index
    %0 = vector.load %arg2[%c0, %c0_0] : memref<16x1xf32, #tpu.memory_space<vmem>>, vector<16x1xf32>
    %1 = vector.shape_cast %0 : vector<16x1xf32> to vector<16x1xf32>
    %2 = vector.broadcast %1 : vector<16x1xf32> to vector<16x128xf32>
    %c0_1 = arith.constant 0 : index
    %c0_2 = arith.constant 0 : index
    %3 = vector.load %arg3[%c0_1, %c0_2] : memref<16x128xf32, #tpu.memory_space<vmem>>, vector<16x128xf32>
    tpu.vector_store %arg3[%c0_1, %c0_2], %2 {strides = array<i32>} : memref<16x128xf32, #tpu.memory_space<vmem>>, vector<16x128xf32>,
    return
  }
  func.func @transform_0(%arg0: i32, %arg1: i32) -> (i32, i32) {
    %c0_i32 = arith.constant 0 : i32
    %c0_i32_0 = arith.constant 0 : i32
    return %arg0, %c0_i32 : i32, i32
  }
  func.func @transform_1(%arg0: i32, %arg1: i32) -> (i32, i32) {
    %c0_i32 = arith.constant 0 : i32
    return %arg0, %arg1 : i32, i32
  }
}

</mosaic_0001>

<bundles_post_ra>
// kernel: tpu_custom_call.1
= control target key start
LH: loop header
LB: loop body
LE: loop exit
PB: predicated region body
PF: predicated region fallthrough
CT: control target
= control target key end

     0   :  { %6 = vsyncpa [#allocation3], 0  ;;  %s501_s0 = inlined_call_operand.vmem [shape: f32[16,1], index: 0, kind: input, shape index: {}]   ;;  %s502_s1 = inlined_call_operand.hbm [shape: f32[16,256], index: 1, kind: output, shape index: {}]  }
   0x1   :  { %8 = vsyncpa [#allocation3 + $0x1], 0  ;;  %s403_s6 = smov 0   ;;  %s405_s7 = smov 0  }
   0x2   :  { %s407_s8 = smov 0   ;;  %s409_s9 = smov 0  }
   0x3   :  { %s411_s10 = smov 0   ;;  %s413_s11 = smov 0  }
   0x4 LB: > { %s239_s12 = sadd.s32 4294967295, %s387_s11   ;;  %s240_s13 = sadd.s32 4294967294, %s387_s11   ;;  %s387_s11 = sphi %s413_s11, %s14_s11   ;;  %s383_s10 = sphi %s411_s10, %s509_s10   ;;  %s379_s9 = sphi %s409_s9, %s508_s9   ;;  %s375_s8 = sphi %s407_s8, %s507_s8   ;;  %s371_s7 = sphi %s405_s7, %s506_s7   ;;  %s367_s6 = sphi %s403_s6, %s505_s6  }
   0x5   : > { %s23_s14 = sadd.s32 1, %s383_s10  ;;  %s61_s15 = sadd.s32 1, %s375_s8 }
   0x6   : > { %p24_p0 = scmp.ge.s32.totalorder %s23_s14, 2  ;;  %p71_p1 = scmp.ne.s32.totalorder %s375_s8, %s371_s7 }
   0x7   : > { %p72_p2 = scmp.eq.s32.totalorder %s239_s12, 1  ;;  %p77_p3 = scmp.ne.s32.totalorder %s371_s7, %s367_s6 }
   0x8   : > { %s511_s14 = smov (%p24_p0, %s23_s14), 0  ;;  %p78_p5 = scmp.eq.s32.totalorder %s240_s13, 1 }
   0x9   : > { %p443_p4 = por %p72_p2, %p71_p1  ;;  %s57_s17 = ssub.s32 %s383_s10, %s511_s14 }
   0xa   : > { %p243_p6 = scmp.ge.s32.totalorder %s387_s11, 1  ;;  %p59_p7 = scmp.eq.s32.totalorder %s57_s17, 0 }
   0xb   : > { %p450_p8 = por %p78_p5, %p77_p3  ;;  %p105_p9 = scmp.lt.s32.totalorder %s387_s11, 3 }
   0xc   : > { %s456_s19 = scalar_select %p59_p7, %s375_s8, %s61_s15  }
   0xd   : > { %p106_p10 = pnand %p243_p6, %p105_p9 }
   0xe   : > { %s122_s24 = sand.u32 (!%p106_p10), 1, %s371_s7   ;;  %s246_s26 = sshll.u32 (!%p106_p10), %s379_s9, 3 }
   0xf   : > { %109 = sbr.rel (%p106_p10) target bundleno = 150 (0x96), region = 24  ;;  %s244_s25 = sshll.u32 (!%p106_p10), %s122_s24, 4 }
  0x10   : > { %s160_s29 = scalar_lea.hbm (!%p106_p10), %s502_s1, %s246_s26  ;;  %s124_s30 = scalar_lea.vmem (!%p106_p10), [#allocation2], %s244_s25 }
  0x11   : > { %s161_s2 = sshll.u32 (!%p106_p10), %s124_s30, 4  ;;  %s163_s3 = sshll.u32 (!%p106_p10), %s160_s29, 4  ;;  %s162_s2 = int_to_ptr.vmem [resolvable:$true] %s161_s2  ;;  %s164_s3 = int_to_ptr.hbm [resolvable:$true] %s163_s3 }
  0x12   : > { %s147_s4 = scalar_lea.sflag (!%p106_p10), [#allocation3], %s122_s24  ;;  %s323_s5 = sshra.s32 (!%p106_p10), %s164_s3, 4  ;;  %s324_s5 = int_to_ptr.hbm [resolvable:$true] %s323_s5 }
  0x13   : > { %s325_s12 = scalar_lea.hbm (!%p106_p10), %s324_s5, 16  ;;  %s329_s15 = scalar_lea.hbm (!%p106_p10), %s502_s1, 32 }
  0x14   : > { %v132_v0 = vld [vmem:[%s501_s0] sm:$0xff]  ;;  %v389_v1 = vmov 0   ;;  %v133_v2 = vld [vmem:[%s501_s0 + $0x8] sm:$0xff]  ;;  %p326_p11 = scmp.ne.s32.totalorder %s324_s5, %s325_s12  ;;  %p330_p0 = scmp.lt.s32.totalorder %s324_s5, %s502_s1 }
  0x15   : > { %308 = vset.pattern.permute.xlu0 %v389_v1  ;;  %p331_p1 = scmp.lt.s32.totalorder %s329_s15, %s325_s12 }
  0x16   : > { %136 = vperm.xlu0 %308, %v132_v0   ;;  %p327_p12 = pnand %p326_p11, %p443_p4 }
  0x17   : > { %p332_p2 = por %p331_p1, %p330_p0 }
  0x18   : > { %p328_p13 = pneg %p327_p12 }
  0x1a   : > { %p333_p3 = pnand %p332_p2, %p328_p13 }
  0x1e   : > { %141 = vperm.xlu0 %308, %v133_v2  }
  0x88   : > { %v137_v3 = vpop.permute.xlu0 %136 }
  0x89   : > { %144 = vst [vmem:[%s124_s30] sm:$0xff] %v137_v3 }
  0x90   : > { %v142_v4 = vpop.permute.xlu0 %141 }
  0x91   : > { %145 = vst [vmem:[%s124_s30 + $0x8] sm:$0xff] %v142_v4 }
  0x92   : > { %336 = shalt.err (!%p333_p3)
}
  0x93   : > { %s390_s21 = smov 128   ;;  %s391_s22 = smov 256  }
  0x94   : > { %s392_s23 = smov 8  }
  0x95   : > { %249 = dma.vmem_to_hbm [thread:$0]  (%p443_p4), %s162_s2, 256, %s164_s3, %s147_s4, %s390_s21, %s391_s22, %s392_s23  }
  0x96 PF: > { %p255_p5 = scmp.ge.s32.totalorder %s387_s11, 2  ;;  %s178_s24 = sand.u32 1, %s367_s6  }
  0x97   : > { %s179_s25 = scalar_lea.sflag [#allocation3], %s178_s24 }
  0x98   : > { %p252_p6 = pnand %p255_p5, %p450_p8 }
  0x9a   : > { %p253_p7 = pneg %p252_p6 }
  0x9c   : > { %362 = dma.done.wait (%p253_p7), %s179_s25, 256  }
  0x9d   : > { %364 = vsyncadd (%p253_p7), %s179_s25, 4294967040  ;;  %s14_s11 = sadd.s32 1, %s387_s11   ;;  %s505_s6 = smov %s371_s7 }
  0x9e   : > { %p11_p9 = scmp.ge.s32.totalorder %s14_s11, 4   ;;  %s506_s7 = smov %s375_s8 }
  0x9f   : > { %s507_s8 = smov %s456_s19  ;;  %s508_s9 = smov %s383_s10 }
  0xa0   : > { %s509_s10 = smov %s511_s14  ;;  %13 = sbr.rel (!%p11_p9) target bundleno = 4 (0x4), region = 59 }
  0xa5   :  { %185 = vsyncpa [#allocation3], 1 }
  0xa6   :  { %187 = vsyncpa [#allocation3 + $0x1], 1 }

</bundles_post_ra>
